<compile_context>
chip_gen: v7x
topology: tpu7x:2x2x1
jax: 0.10.0
libtpu: 0.0.40
codegen_flags: <defaults>
</compile_context>

<pallas_src>
import functools

import jax
import jax.numpy as jnp
from jax.experimental import pallas as pl
from jax.experimental.pallas import tpu as pltpu

# ---- module hyper-parameters (stand-ins for the interactive input() calls) ----
FE = 4   # number of features
N  = 3   # degree of the polynomial
B  = 8   # batch size for the demo

_SUB = 8                    # f32 sublanes per vreg
_LANE = 128                 # lanes per vreg
_PAD = _SUB * _LANE         # batch padding granularity for the sublane fold


def _poly_linear_kernel(x_ref, w_ref, b_ref, o_ref):
    """Fused polynomial expansion + linear layer, batch folded onto sublanes+lanes.

    x_ref: (FE*8, BT8) VMEM -- batch tile; row f*8+s, lane c is batch element
                               s*(B_pad/8) + global_lane(c), feature f
    w_ref: (FE*8, N)   VMEM -- weight tiled over sublanes; w_ref[f*8+s, i]
                               multiplies x[f]**(i+1)
    b_ref: (1, 1)      SMEM -- Linear bias
    o_ref: (8, BT8)    VMEM -- sublane- and lane-dense output tile
    """
    x = x_ref[...]                         # (FE*8, BT8)
    w = w_ref[...]                         # (FE*8, N), loaded once

    # Horner: p(t) = w[:,0] + w[:,1]*t + ... + w[:,N-1]*t^(N-1)   (pure VPU)
    acc = w[:, N - 1:N]                    # (FE*8, 1)
    for i in range(N - 2, -1, -1):         # small static N -> unrolled
        acc = acc * x + w[:, i:i + 1]
    contrib = acc * x                      # = sum_i w[.,i] * x**(i+1)

    # Feature reduction: FE-1 full-sublane VPU adds (no XLU cross-sublane sum).
    s = contrib[0:_SUB]
    for f in range(1, FE):
        s = s + contrib[f * _SUB:(f + 1) * _SUB]
    o_ref[...] = s + b_ref[0, 0]


def _pow2_floor(v):
    return 1 << (max(int(v), 1).bit_length() - 1)


@functools.partial(jax.jit, static_argnames=("block_b",))
def poly_linear_regression(x, weight, bias, *, block_b=262144):
    """x: (B, FE) f32; weight: (1, N*FE) f32; bias: (1,) f32 -> (B, 1) f32."""
    bx, fe = x.shape
    assert fe == FE, (fe, FE)
    assert weight.shape == (1, N * FE), weight.shape

    # Pad the batch only to the sublane-fold granularity (8*128), not to the tile.
    b_pad = pl.cdiv(bx, _PAD) * _PAD
    # Tile = largest power-of-two that divides b_pad and is <= block_b.
    bt = max(min(_pow2_floor(block_b), b_pad & -b_pad), _PAD)
    # Keep >= 4 grid steps when there is enough data (v7x: both TensorCores,
    # overlapped DMA issue), but never shrink below 64K-lane (~1 MiB) blocks.
    while b_pad // bt < 4 and bt >= 2 * 65536:
        bt //= 2
    bt8 = bt // _SUB

    # Single fused relayout pass under jit: transpose -> f32 -> pad -> fold.
    x_t = jnp.pad(x.T.astype(jnp.float32), ((0, 0), (0, b_pad - bx)))
    x_fold = x_t.reshape(FE * _SUB, b_pad // _SUB)          # (FE*8, B_pad/8)

    # weight[0, i*FE + f] multiplies x[:, f]**(i+1); transpose and tile to sublanes.
    w_t = weight.reshape(N, FE).T.astype(jnp.float32)       # (FE, N)
    w8 = jnp.repeat(w_t, _SUB, axis=0)                      # (FE*8, N)
    b = bias.reshape(1, 1).astype(jnp.float32)

    # Scoped VMEM: ~40*bt bytes double-buffered. Default bt=256K -> ~10 MiB,
    # inside even v5e's 16 MiB default; only raise the limit for bigger tiles.
    vmem_bytes = 2 * (FE * _SUB * bt8 * 4 + _SUB * bt8 * 4) + FE * _SUB * N * 4
    cparams = dict(dimension_semantics=("parallel",))
    if vmem_bytes > 12 * 1024 * 1024:
        cparams["vmem_limit_bytes"] = min(vmem_bytes + (4 << 20), 56 << 20)

    out = pl.pallas_call(
        _poly_linear_kernel,
        out_shape=jax.ShapeDtypeStruct((_SUB, b_pad // _SUB), jnp.float32),
        grid=(b_pad // bt,),
        in_specs=[
            pl.BlockSpec((FE * _SUB, bt8), lambda i: (0, i)),      # x tile
            pl.BlockSpec((FE * _SUB, N), lambda i: (0, 0)),        # weights
            pl.BlockSpec((1, 1), lambda i: (0, 0),
                         memory_space=pltpu.MemorySpace.SMEM),     # bias
        ],
        out_specs=pl.BlockSpec((_SUB, bt8), lambda i: (0, i)),
        compiler_params=pltpu.CompilerParams(**cparams),
    )(x_fold, w8, b)

    # Contiguous unfold: out[s, c] is batch element s*(B_pad/8)+c -- exactly the
    # fold used for x -- so reshape(b_pad) restores batch order; padded tail
    # (bias-only garbage) is discarded by the slice.
    return out.reshape(b_pad)[:bx].reshape(bx, 1)


def _reference(x, weight, bias):
    """Pure-JAX reference mirroring the PyTorch forward exactly."""
    poly = jnp.concatenate([x ** i for i in range(1, N + 1)], axis=1)  # (B, N*FE)
    return poly @ weight.T + bias                                      # (B, 1)


if __name__ == "__main__":
    key = jax.random.PRNGKey(0)
    kx, kw, kb, kx2 = jax.random.split(key, 4)

    # Deterministic inputs / parameters (synthetic, not a checkpoint).
    x = jax.random.normal(kx, (B, FE), dtype=jnp.float32)
    weight = jax.random.normal(kw, (1, N * FE), dtype=jnp.float32) * 0.1
    bias = jax.random.normal(kb, (1,), dtype=jnp.float32) * 0.1

    out = jax.block_until_ready(poly_linear_regression(x, weight, bias))
    ref = _reference(x, weight, bias)
    assert out.shape == (B, 1), out.shape
    assert jnp.allclose(out, ref, atol=1e-4, rtol=1e-5), (out, ref)

    # Exercise the pipelined multi-tile grid (B=5000 -> pad 5120 = 5 x 1024 lanes).
    x2 = jax.random.normal(kx2, (5000, FE), dtype=jnp.float32)
    out2 = jax.block_until_ready(
        poly_linear_regression(x2, weight, bias, block_b=1024))
    ref2 = _reference(x2, weight, bias)
    assert out2.shape == (5000, 1), out2.shape
    assert jnp.allclose(out2, ref2, atol=1e-4, rtol=1e-5)

    print("KERNEL_OK")
</pallas_src>

<mosaic_0001>
module attributes {stable_mosaic.version = 11 : i64} {
  func.func @_poly_linear_kernel(%arg0: i32, %arg1: memref<32x128xf32, #tpu.memory_space<vmem>>, %arg2: memref<32x3xf32, #tpu.memory_space<vmem>>, %arg3: memref<1x1xf32, #tpu.memory_space<smem>>, %arg4: memref<8x128xf32, #tpu.memory_space<vmem>>) attributes {dimension_semantics = [#tpu.dimension_semantics<parallel>], iteration_bounds = array<i64: 1>, scalar_prefetch = 0 : i64, scratch_operands = 0 : i64, tpu.core_type = #tpu.core_type<tc>, window_params = [{transform_indices = @transform_0, window_bounds = array<i64: 32, 128>}, {pipeline_mode = #tpu.pipeline_mode<synchronous>, transform_indices = @transform_1, window_bounds = array<i64: 32, 3>}, {transform_indices = @transform_2, window_bounds = array<i64: 1, 1>}, {transform_indices = @transform_3, window_bounds = array<i64: 8, 128>}]} {
    %c0 = arith.constant 0 : index
    %c0_0 = arith.constant 0 : index
    %0 = vector.load %arg1[%c0, %c0_0] : memref<32x128xf32, #tpu.memory_space<vmem>>, vector<32x128xf32>
    %c0_1 = arith.constant 0 : index
    %c0_2 = arith.constant 0 : index
    %1 = vector.load %arg2[%c0_1, %c0_2] : memref<32x3xf32, #tpu.memory_space<vmem>>, vector<32x3xf32>
    %2 = vector.extract_strided_slice %1 {offsets = [0, 2], sizes = [32, 1], strides = [1, 1]} : vector<32x3xf32> to vector<32x1xf32>
    %3 = vector.broadcast %2 : vector<32x1xf32> to vector<32x128xf32>
    %4 = arith.mulf %3, %0 : vector<32x128xf32>
    %5 = vector.extract_strided_slice %1 {offsets = [0, 1], sizes = [32, 1], strides = [1, 1]} : vector<32x3xf32> to vector<32x1xf32>
    %6 = vector.broadcast %5 : vector<32x1xf32> to vector<32x128xf32>
    %7 = arith.addf %4, %6 : vector<32x128xf32>
    %8 = arith.mulf %7, %0 : vector<32x128xf32>
    %9 = vector.extract_strided_slice %1 {offsets = [0, 0], sizes = [32, 1], strides = [1, 1]} : vector<32x3xf32> to vector<32x1xf32>
    %10 = vector.broadcast %9 : vector<32x1xf32> to vector<32x128xf32>
    %11 = arith.addf %8, %10 : vector<32x128xf32>
    %12 = arith.mulf %11, %0 : vector<32x128xf32>
    %13 = vector.extract_strided_slice %12 {offsets = [0, 0], sizes = [8, 128], strides = [1, 1]} : vector<32x128xf32> to vector<8x128xf32>
    %14 = vector.extract_strided_slice %12 {offsets = [8, 0], sizes = [8, 128], strides = [1, 1]} : vector<32x128xf32> to vector<8x128xf32>
    %15 = arith.addf %13, %14 : vector<8x128xf32>
    %16 = vector.extract_strided_slice %12 {offsets = [16, 0], sizes = [8, 128], strides = [1, 1]} : vector<32x128xf32> to vector<8x128xf32>
    %17 = arith.addf %15, %16 : vector<8x128xf32>
    %18 = vector.extract_strided_slice %12 {offsets = [24, 0], sizes = [8, 128], strides = [1, 1]} : vector<32x128xf32> to vector<8x128xf32>
    %19 = arith.addf %17, %18 : vector<8x128xf32>
    %c0_3 = arith.constant 0 : index
    %c0_4 = arith.constant 0 : index
    %20 = memref.load %arg3[%c0_3, %c0_4] : memref<1x1xf32, #tpu.memory_space<smem>>
    %21 = vector.broadcast %20 : f32 to vector<8x128xf32>
    %22 = arith.addf %19, %21 : vector<8x128xf32>
    %c0_5 = arith.constant 0 : index
    %c0_6 = arith.constant 0 : index
    %23 = vector.load %arg4[%c0_5, %c0_6] : memref<8x128xf32, #tpu.memory_space<vmem>>, vector<8x128xf32>
    tpu.vector_store %arg4[%c0_5, %c0_6], %22 {strides = array<i32>} : memref<8x128xf32, #tpu.memory_space<vmem>>, vector<8x128xf32>,
    return
  }
  func.func @transform_0(%arg0: i32) -> (i32, i32) {
    %c0_i32 = arith.constant 0 : i32
    %c0_i32_0 = arith.constant 0 : i32
    return %c0_i32, %arg0 : i32, i32
  }
  func.func @transform_1(%arg0: i32) -> (i32, i32) {
    %c0_i32 = arith.constant 0 : i32
    %c0_i32_0 = arith.constant 0 : i32
    %c0_i32_1 = arith.constant 0 : i32
    return %c0_i32, %c0_i32_0 : i32, i32
  }
  func.func @transform_2(%arg0: i32) -> (i32, i32) {
    %c0_i32 = arith.constant 0 : i32
    %c0_i32_0 = arith.constant 0 : i32
    %c0_i32_1 = arith.constant 0 : i32
    return %c0_i32, %c0_i32_0 : i32, i32
  }
  func.func @transform_3(%arg0: i32) -> (i32, i32) {
    %c0_i32 = arith.constant 0 : i32
    %c0_i32_0 = arith.constant 0 : i32
    return %c0_i32, %arg0 : i32, i32
  }
}

</mosaic_0001>

<bundles_post_ra>
// kernel: poly_linear_regression.1
= control target key start
LH: loop header
LB: loop body
LE: loop exit
PB: predicated region body
PF: predicated region fallthrough
CT: control target
= control target key end

     0   :  { %v117_v0 = vmov 2   ;;  %v118_v4 = vmov 1   ;;  %v119_v6 = vmov 0   ;;  %s170_s1 = inlined_call_operand.vmem [shape: f32[32,3], index: 1, kind: input, shape index: {}]   ;;  %s171_s0 = inlined_call_operand.vmem [shape: f32[32,128], index: 0, kind: input, shape index: {}]   ;;  %s172_s2 = inlined_call_operand.<no memory space> [shape: f32[1,1], index: 2, kind: input, shape index: {}]   ;;  %s173_s3 = inlined_call_operand.vmem [shape: f32[8,128], index: 3, kind: output, shape index: {}]  }
   0x1   :  { %110 = vset.pattern.permute.xlu1 %v117_v0  ;;  %109 = vset.pattern.permute.xlu0 %v117_v0  ;;  %v21_v1 = vld [vmem:[%s170_s1 + $0x10] sm:$0xff]  ;;  %v19_v2 = vld [vmem:[%s170_s1] sm:$0xff]  ;;  %v20_v3 = vld [vmem:[%s170_s1 + $0x8] sm:$0xff]  ;;  %v99_v45 = vstv %s172_s2 }
   0x2   :  { %35 = vperm.xlu1 %110, %v21_v1   ;;  %25 = vperm.xlu0 %109, %v19_v2   ;;  %v22_v5 = vld [vmem:[%s170_s1 + $0x18] sm:$0xff]  ;;  %v15_v11 = vld [vmem:[%s171_s0] sm:$0xff]  ;;  %v16_v13 = vld [vmem:[%s171_s0 + $0x8] sm:$0xff] }
   0x3   :  { %v17_v17 = vld [vmem:[%s171_s0 + $0x10] sm:$0xff]  ;;  %v18_v21 = vld [vmem:[%s171_s0 + $0x18] sm:$0xff] }
   0x6   :  { %111 = vset.pattern.permute.xlu1 %v118_v4  ;;  %30 = vperm.xlu0 %109, %v20_v3  }
   0x7   :  { %48 = vperm.xlu1 %111, %v19_v2  }
   0xa   :  { %112 = vset.pattern.permute.xlu0 %v118_v4 }
   0xb   :  { %113 = vset.pattern.permute.xlu1 %v117_v0  ;;  %52 = vperm.xlu0 %112, %v20_v3  }
   0xc   :  { %40 = vperm.xlu1 %113, %v22_v5  }
   0xf   :  { %60 = vperm.xlu0 %112, %v22_v5  }
  0x10   :  { %114 = vset.pattern.permute.xlu1 %v118_v4 }
  0x11   :  { %56 = vperm.xlu1 %114, %v21_v1  }
  0x13   :  { %116 = vset.pattern.permute.xlu0 %v119_v6 }
  0x14   :  { %76 = vperm.xlu0 %116, %v20_v3  }
  0x15   :  { %115 = vset.pattern.permute.xlu1 %v119_v6 }
  0x16   :  { %72 = vperm.xlu1 %115, %v19_v2  }
  0x1a   :  { %80 = vperm.xlu1 %115, %v21_v1  }
  0x1e   :  { %84 = vperm.xlu1 %115, %v22_v5  }
  0x81   :  { %v36_v7 = vpop.permute.xlu1 %35  ;;  %v26_v8 = vpop.permute.xlu0 %25 }
  0x82   :  { %v43_v15 = vmul.f32 %v26_v8, %v15_v11  ;;  %v45_v22 = vmul.f32 %v36_v7, %v17_v17 }
  0x85   :  { %v31_v9 = vpop.permute.xlu0 %30 }
  0x86   :  { %v49_v10 = vpop.permute.xlu1 %48  ;;  %v44_v16 = vmul.f32 %v31_v9, %v16_v13 }
  0x87   :  { %v63_v19 = vadd.f32 %v49_v10, %v43_v15 }
  0x89   :  { %v67_v26 = vmul.f32 %v63_v19, %v15_v11 }
  0x8a   :  { %v53_v12 = vpop.permute.xlu0 %52 }
  0x8b   :  { %v41_v14 = vpop.permute.xlu1 %40  ;;  %v64_v23 = vadd.f32 %v53_v12, %v44_v16 }
  0x8c   :  { %v46_v24 = vmul.f32 %v41_v14, %v18_v21 }
  0x8d   :  { %v68_v29 = vmul.f32 %v64_v23, %v16_v13 }
  0x8e   :  { %v61_v18 = vpop.permute.xlu0 %60 }
  0x8f   :  { %v66_v31 = vadd.f32 %v61_v18, %v46_v24 }
  0x90   :  { %v57_v20 = vpop.permute.xlu1 %56 }
  0x91   :  { %v65_v25 = vadd.f32 %v57_v20, %v45_v22  ;;  %v70_v39 = vmul.f32 %v66_v31, %v18_v21 }
  0x93   :  { %v77_v27 = vpop.permute.xlu0 %76  ;;  %v69_v33 = vmul.f32 %v65_v25, %v17_v17 }
  0x94   :  { %v88_v32 = vadd.f32 %v77_v27, %v68_v29 }
  0x95   :  { %v73_v28 = vpop.permute.xlu1 %72 }
  0x96   :  { %v87_v30 = vadd.f32 %v73_v28, %v67_v26  ;;  %v92_v37 = vmul.f32 %v88_v32, %v16_v13 }
  0x98   :  { %v91_v35 = vmul.f32 %v87_v30, %v15_v11 }
  0x99   :  { %v81_v34 = vpop.permute.xlu1 %80 }
  0x9a   :  { %v89_v36 = vadd.f32 %v81_v34, %v69_v33  ;;  %v95_v41 = vadd.f32 %v92_v37, %v91_v35 }
  0x9c   :  { %v93_v38 = vmul.f32 %v89_v36, %v17_v17 }
  0x9d   :  { %v85_v40 = vpop.permute.xlu1 %84 }
  0x9e   :  { %v90_v42 = vadd.f32 %v85_v40, %v70_v39  ;;  %v96_v43 = vadd.f32 %v95_v41, %v93_v38 }
  0xa0   :  { %v94_v44 = vmul.f32 %v90_v42, %v18_v21 }
  0xa2   :  { %v97_v46 = vadd.f32 %v96_v43, %v94_v44 }
  0xa4   :  { %v100_v47 = vadd.f32 %v99_v45, %v97_v46 }
  0xa6   :  { %101 = vst [vmem:[%s173_s3] sm:$0xff] %v100_v47 }

</bundles_post_ra>
